<compile_context>
chip_gen: v7x
topology: tpu7x:2x2x1
jax: 0.10.0
libtpu: 0.0.40
codegen_flags: <defaults>
</compile_context>

<pallas_src>
import jax
import jax.numpy as jnp
from jax.experimental import pallas as pl
from jax.experimental.pallas import tpu as pltpu


def _bcast_write_kernel(proj_ref, out_ref):
    # proj_ref: (1, T*E) float32 -- projected one-hot slice; constant block
    #           (index_map is constant, so it is DMA'd once and stays resident).
    # out_ref : (BN_TILE, T*E)   -- lane-dense output block for this grid step.
    out_ref[...] = jnp.broadcast_to(proj_ref[...], out_ref.shape)


def _round_up(x, m):
    return ((x + m - 1) // m) * m


def one_hot_encoder_time_forward(time_I, w, b, index, batch_size, node_num,
                                 time_history=12, time_num=288):
    """time_I: (time_num, time_num), w: (embed, time_num), b: (embed,).
    index: python int (static, mirrors the PyTorch control flow)."""
    embed_size = w.shape[0]
    T = time_history

    # --- glue: wrap-around slice of the (learnable) one-hot table -----------
    start = index % time_num
    if start + T > time_num:
        wrap = (index + T) % time_num
        onehot = jnp.concatenate((time_I[start:, :], time_I[:wrap, :]), axis=0)
    else:
        onehot = time_I[start:start + T, :]
    onehot = onehot.astype(jnp.float32)                      # (T, time_num)

    # --- hoisted projection: runs once; irrelevant next to the write-back ---
    proj = jnp.dot(onehot, jnp.transpose(w).astype(jnp.float32),
                   preferred_element_type=jnp.float32)
    proj = proj + b.reshape(1, embed_size).astype(jnp.float32)   # (T, E)

    TE = T * embed_size                                      # 12*32 = 384 = 3*128
    proj_flat = proj.reshape(1, TE)                          # lane-dense slab

    bn = batch_size * node_num

    # --- tiny-bn fallback: let XLA fuse / broadcast, skip kernel launch -----
    if bn < 8:
        return jnp.broadcast_to(proj.reshape(1, 1, T, embed_size),
                                (batch_size, node_num, T, embed_size))

    # --- tiling: many rows per step, multiple of 8 sublanes, no padding -----
    BN_TILE = min(2048, _round_up(bn, 8))
    num_tiles = pl.cdiv(bn, BN_TILE)
    if num_tiles > 1 and num_tiles % 2 == 1:
        # even step count -> balanced across the two TensorCores on v7x
        BN_TILE = _round_up(pl.cdiv(bn, num_tiles + 1), 8)
        num_tiles = pl.cdiv(bn, BN_TILE)

    out_flat = pl.pallas_call(
        _bcast_write_kernel,
        out_shape=jax.ShapeDtypeStruct((bn, TE), jnp.float32),
        grid_spec=pltpu.PrefetchScalarGridSpec(
            num_scalar_prefetch=0,
            grid=(num_tiles,),
            in_specs=[
                # constant block: fetched once, stays resident in VMEM
                pl.BlockSpec((1, TE), lambda i: (0, 0)),
            ],
            out_specs=pl.BlockSpec((BN_TILE, TE), lambda i: (i, 0)),
        ),
        compiler_params=pltpu.CompilerParams(
            # no cross-step dependency -> both TCs split the write-back on v7x
            dimension_semantics=("parallel",)),
        cost_estimate=pl.CostEstimate(
            flops=0,                      # projection is hoisted out
            transcendentals=0,
            bytes_accessed=bn * TE * 4 + TE * 4),
    )(proj_flat)

    # row-major reshape is a free bitcast (no slice needed: out_shape is exact)
    return out_flat.reshape(batch_size, node_num, T, embed_size)


def _reference(time_I, w, b, index, batch_size, node_num, time_history,
               time_num):
    start = index % time_num
    if start + time_history > time_num:
        onehot = jnp.concatenate(
            (time_I[start:, :],
             time_I[:(index + time_history) % time_num, :]), axis=0)
    else:
        onehot = time_I[start:start + time_history, :]
    proj = onehot @ w.T + b
    return jnp.broadcast_to(proj[None, None],
                            (batch_size, node_num, time_history, w.shape[0]))


if __name__ == "__main__":
    # module hyper-params (defaults of one_hot_encoder_time)
    embed_size = 32
    time_history = 12
    time_num = 288

    key = jax.random.PRNGKey(0)
    k_w, k_b = jax.random.split(key)

    # deterministic parameter init (shapes from __init__)
    time_I = jnp.eye(time_num, dtype=jnp.float32)                 # (288, 288)
    bound = 1.0 / (time_num ** 0.5)
    w = jax.random.uniform(k_w, (embed_size, time_num),
                           minval=-bound, maxval=bound,
                           dtype=jnp.float32)                     # Linear.weight
    b = jax.random.uniform(k_b, (embed_size,),
                           minval=-bound, maxval=bound,
                           dtype=jnp.float32)                     # Linear.bias

    # config 1: wrap-around branch (283 + 12 > 288), bn = 16 (aligned rows)
    # config 2: non-wrap branch, bn = 30 (ragged -> masked tail block)
    for (batch_size, node_num, index) in [(2, 8, 283), (3, 10, 5)]:
        out = one_hot_encoder_time_forward(
            time_I, w, b, index, batch_size, node_num,
            time_history=time_history, time_num=time_num)
        out = jax.block_until_ready(out)

        ref = _reference(time_I, w, b, index, batch_size, node_num,
                         time_history, time_num)
        assert out.shape == (batch_size, node_num, time_history, embed_size)
        assert jnp.allclose(out, ref, atol=1e-5, rtol=1e-5)

    print("KERNEL_OK")
</pallas_src>

<mosaic_0001>
module attributes {stable_mosaic.version = 11 : i64} {
  func.func @_bcast_write_kernel(%arg0: i32, %arg1: memref<1x384xf32, #tpu.memory_space<vmem>>, %arg2: memref<16x384xf32, #tpu.memory_space<vmem>>) attributes {dimension_semantics = [#tpu.dimension_semantics<parallel>], iteration_bounds = array<i64: 1>, scalar_prefetch = 0 : i64, scratch_operands = 0 : i64, tpu.core_type = #tpu.core_type<tc>, window_params = [{pipeline_mode = #tpu.pipeline_mode<synchronous>, transform_indices = @transform_0, window_bounds = array<i64: 1, 384>}, {transform_indices = @transform_1, window_bounds = array<i64: 16, 384>}]} {
    %c0 = arith.constant 0 : index
    %c0_0 = arith.constant 0 : index
    %0 = vector.load %arg1[%c0, %c0_0] : memref<1x384xf32, #tpu.memory_space<vmem>>, vector<1x384xf32>
    %1 = vector.shape_cast %0 : vector<1x384xf32> to vector<1x384xf32>
    %2 = vector.broadcast %1 : vector<1x384xf32> to vector<16x384xf32>
    %c0_1 = arith.constant 0 : index
    %c0_2 = arith.constant 0 : index
    %3 = vector.load %arg2[%c0_1, %c0_2] : memref<16x384xf32, #tpu.memory_space<vmem>>, vector<16x384xf32>
    tpu.vector_store %arg2[%c0_1, %c0_2], %2 {strides = array<i32>} : memref<16x384xf32, #tpu.memory_space<vmem>>, vector<16x384xf32>,
    return
  }
  func.func @transform_0(%arg0: i32) -> (i32, i32) {
    %c0_i32 = arith.constant 0 : i32
    %c0_i32_0 = arith.constant 0 : i32
    %c0_i32_1 = arith.constant 0 : i32
    return %c0_i32, %c0_i32_0 : i32, i32
  }
  func.func @transform_1(%arg0: i32) -> (i32, i32) {
    %c0_i32 = arith.constant 0 : i32
    %c0_i32_0 = arith.constant 0 : i32
    return %arg0, %c0_i32 : i32, i32
  }
}

</mosaic_0001>

<bundles_post_ra>
// kernel: tpu_custom_call.1
= control target key start
LH: loop header
LB: loop body
LE: loop exit
PB: predicated region body
PF: predicated region fallthrough
CT: control target
= control target key end

     0   :  { %6 = vsyncpa [#allocation3], 0  ;;  %s151_s0 = inlined_call_operand.hbm [shape: f32[1,384], index: 0, kind: input, shape index: {}]   ;;  %s152_s1 = inlined_call_operand.hbm [shape: f32[16,384], index: 1, kind: output, shape index: {}]  }
   0x1   :  { %7 = vsyncpa [#allocation4], 0  ;;  %s113_s6 = smov [#allocation2]   ;;  %s65_s10 = scalar_lea.hbm %s151_s0, 48 }
   0x2   :  { %s14_s7 = sshll.u32 %s113_s6, 4  ;;  %p66_p0 = scmp.ne.s32.totalorder %s151_s0, %s65_s10  ;;  %s15_s7 = int_to_ptr.vmem [resolvable:$true] %s14_s7 }
   0x3   :  { %p69_p1 = scmp.lt.u32.totalorder %s65_s10, %s151_s0 }
   0x5   :  { %p71_p2 = pnand %p69_p1, %p66_p0 }
   0x7   :  { %74 = shalt.err (!%p71_p2)
}
   0x8   :  { %s75_s15 = scalar_lea.vmem %s15_s7, 48  ;;  %s79_s16 = scalar_lea.vmem %s15_s7, 64 }
   0x9   :  { %p76_p3 = scmp.ne.s32.totalorder %s15_s7, %s75_s15  ;;  %p80_p4 = scmp.lt.s32.totalorder %s15_s7, %s15_s7 }
   0xa   :  { %p81_p5 = scmp.lt.s32.totalorder %s79_s16, %s75_s15 }
   0xc   :  { %p82_p6 = por %p81_p5, %p80_p4 }
   0xe   :  { %p83_p7 = pnand %p82_p6, %p76_p3 }
  0x10   :  { %86 = shalt.err (!%p83_p7)
}
  0x11   :  { %17 = dma.hbm_to_vmem [thread:$0]  %s151_s0, 48, %s15_s7, [#allocation3]  }
  0x12   :  { %109 = dma.done.wait [#allocation3], 48  }
  0x13   :  { %110 = vsyncadd [#allocation3], 4294967248  ;;  %v23_v0 = vlaneseq  ;;  %s114_s19 = smov [#allocation5]   ;;  %v21_v5 = vld [vmem:[#allocation2] sm:$0x7] }
  0x14   :  { %s49_s20 = sshll.u32 %s114_s19, 4  ;;  %s50_s20 = int_to_ptr.vmem [resolvable:$true] %s49_s20 }
  0x15   :  { %v24_v1 = vshrl.u32 %v23_v0, 7  ;;  %s87_s0 = scalar_lea.vmem %s50_s20, 768  ;;  %p92_p9 = scmp.lt.s32.totalorder %s50_s20, %s50_s20 }
  0x16   :  { %p88_p8 = scmp.ne.s32.totalorder %s50_s20, %s87_s0  ;;  %p93_p10 = scmp.lt.s32.totalorder %s87_s0, %s87_s0 }
  0x17   :  { %v25_v2 = vsub.s32 0, %v24_v1  ;;  %v29_v3 = vsub.s32 1, %v24_v1  ;;  %v33_v4 = vsub.s32 2, %v24_v1 }
  0x18   :  { %p94_p11 = por %p93_p10, %p92_p9 }
  0x19   :  { %v26_v6 = vrot.slane %v21_v5, %v25_v2  ;;  %v30_v7 = vrot.slane %v21_v5, %v29_v3  ;;  %v34_v8 = vrot.slane %v21_v5, %v33_v4 }
  0x1a   :  { %p95_p12 = pnand %p94_p11, %p88_p8 }
  0x1b   :  { %38 = vst [vmem:[#allocation5] sm:$0xff] %v26_v6  ;;  %41 = vst [vmem:[#allocation5 + $0x18] sm:$0xff] %v26_v6 }
  0x1c   :  { %39 = vst [vmem:[#allocation5 + $0x8] sm:$0xff] %v30_v7  ;;  %42 = vst [vmem:[#allocation5 + $0x20] sm:$0xff] %v30_v7 }
  0x1d   :  { %40 = vst [vmem:[#allocation5 + $0x10] sm:$0xff] %v34_v8  ;;  %43 = vst [vmem:[#allocation5 + $0x28] sm:$0xff] %v34_v8 }
  0x1e   :  { %98 = shalt.err (!%p95_p12)
}
  0x1f   :  { %s99_s23 = scalar_lea.hbm %s152_s1, 768 }
  0x20   :  { %p100_p13 = scmp.ne.s32.totalorder %s152_s1, %s99_s23  ;;  %p103_p0 = scmp.lt.u32.totalorder %s99_s23, %s152_s1 }
  0x22   :  { %p105_p1 = pnand %p103_p0, %p100_p13 }
  0x24   :  { %108 = shalt.err (!%p105_p1)
}
  0x25   :  { %s115_s28 = smov 384   ;;  %s116_s29 = smov 24  }
  0x26   :  { %55 = dma.vmem_to_hbm [thread:$0]  %s50_s20, 768, %s152_s1, [#allocation4], %s115_s28, %s115_s28, %s116_s29  }
  0x27   :  { %111 = dma.done.wait [#allocation4], 768  }
  0x28   :  { %112 = vsyncadd [#allocation4], 4294966528 }
  0x29   :  { %59 = vsyncpa [#allocation3], 1 }
  0x2a   :  { %60 = vsyncpa [#allocation4], 1 }

</bundles_post_ra>
